<compile_context>
chip_gen: v5e
topology: v5e:2x2
jax: 0.10.0
libtpu: 0.0.40
codegen_flags: <defaults>
</compile_context>

<pallas_src>
import functools

import jax
import jax.numpy as jnp
from jax.experimental import pallas as pl
from jax.experimental.pallas import tpu as pltpu

_LANE_CHUNK = 512      # lanes folded per cross-lane reduce (4 lane-blocks)
_MAX_TL = 16384        # cap on the lane tile so the static chunk loop stays short


def _tile_max_sum(x_ref, mask_fn=None):
    """Reduce a (tm, tl) VMEM tile to per-row (tm, 1) f32 max and f32 sum.

    Works in <=_LANE_CHUNK-lane chunks: each chunk is reduced cross-lane (XLU,
    otherwise idle in this memory-bound kernel) directly into (tm, 1) f32
    accumulators, so nothing wide stays live across the chunk loop and the
    64-vreg file is never exceeded regardless of tm.
    """
    tm, tl = x_ref.shape
    t_max = None
    t_sum = None
    start = 0
    while start < tl:
        size = min(_LANE_CHUNK, tl - start)
        blk = x_ref[:, start:start + size]
        if mask_fn is None:
            blk_max_in = blk
            blk_sum_in = blk.astype(jnp.float32)
        else:
            valid = mask_fn(start, size)                      # (tm, size) bool
            blk_max_in = jnp.where(valid, blk, -jnp.inf)
            blk_sum_in = jnp.where(valid, blk.astype(jnp.float32), 0.0)
        c_max = jnp.max(blk_max_in, axis=-1, keepdims=True).astype(jnp.float32)
        c_sum = jnp.sum(blk_sum_in, axis=-1, keepdims=True)
        t_max = c_max if t_max is None else jnp.maximum(t_max, c_max)
        t_sum = c_sum if t_sum is None else t_sum + c_sum
        start += size
    return t_max, t_sum


def _concat_pool_single_kernel(x_ref, out_ref, *, inv_l):
    # tl == L: whole reduction extent in one contiguous block, no carry needed.
    t_max, t_sum = _tile_max_sum(x_ref)
    out_ref[0] = t_max.astype(out_ref.dtype)
    out_ref[1] = (t_sum * inv_l).astype(out_ref.dtype)


def _concat_pool_tiled_kernel(x_ref, out_ref, max_acc, sum_acc, *,
                              inv_l, l_true, tl, masked):
    li = pl.program_id(1)

    @pl.when(li == 0)
    def _init():
        max_acc[...] = jnp.full_like(max_acc, -jnp.inf)
        sum_acc[...] = jnp.zeros_like(sum_acc)

    mask_fn = None
    if masked:
        tm = x_ref.shape[0]

        def mask_fn(start, size):
            lane = jax.lax.broadcasted_iota(jnp.int32, (tm, size), 1)
            return (lane + (li * tl + start)) < l_true

    t_max, t_sum = _tile_max_sum(x_ref, mask_fn)
    max_acc[...] = jnp.maximum(max_acc[...], t_max)
    sum_acc[...] = sum_acc[...] + t_sum

    @pl.when(li == pl.num_programs(1) - 1)
    def _finalize():
        out_ref[0] = max_acc[...].astype(out_ref.dtype)
        out_ref[1] = (sum_acc[...] * inv_l).astype(out_ref.dtype)


def _round_up(x, m):
    return -(-x // m) * m


def _choose_tile(total, cap, align):
    """Return (tile, padded_total).

    tile is either the full extent (always a legal block shape) or an aligned
    size <= max(cap, align); padded_total is a multiple of tile and >= total.
    Never silently exceeds the byte budget the cap encodes.
    """
    if total <= cap:
        return total, total
    cap_al = max(align, (cap // align) * align)
    d = cap_al
    while d >= align:                              # largest aligned exact divisor
        if total % d == 0:
            return d, total
        d -= align
    n_tiles = -(-total // cap_al)                  # otherwise: minimal zero padding
    tile = _round_up(-(-total // n_tiles), align)
    return tile, n_tiles * tile


def adaptive_concat_pool2d(x, *, max_block_bytes=None, vmem_limit_bytes=None):
    """Equivalent of torch.cat([AdaptiveMaxPool2d(1)(x),
                                AdaptiveAvgPool2d(1)(x)], dim=1).

    Returns (N, 2C, 1, 1): channels [0:C] = global max, [C:2C] = global mean.
    The UNet forward uses the mean half (F.adaptive_avg_pool2d(e5, 1)).
    """
    # TODO(synk): only the default output size (1,1) (global pooling) is implemented.
    if not jnp.issubdtype(x.dtype, jnp.floating):
        raise ValueError("adaptive_concat_pool2d requires a floating dtype "
                         f"(-inf max init, 1/L scaling); got {x.dtype}")

    N, C, H, W = x.shape
    M, L = N * C, H * W
    itemsize = jnp.dtype(x.dtype).itemsize
    align_m = max(8, 32 // itemsize)        # sublane align: 8 f32 / 16 bf16 / 32 int8

    # ---- VMEM budget (generation-aware; safe for v7x's 64 MiB per-core VMEM) ----
    try:
        vmem_cap = int(pltpu.get_tpu_info().vmem_capacity_bytes)
    except Exception:
        vmem_cap = 64 * 1024 * 1024          # conservative fallback (v7x per-core)
    if vmem_limit_bytes is None:
        vmem_limit_bytes = min(48 * 1024 * 1024, (vmem_cap * 3) // 4)
    if max_block_bytes is None:
        max_block_bytes = min(16 * 1024 * 1024, vmem_limit_bytes // 3)

    # ---- lane (reduction) tile: take the whole extent whenever it fits ---------
    if L * align_m * itemsize <= max_block_bytes and L <= _MAX_TL:
        tl, l_pad = L, L
    else:
        cap_l = max(128, min(_MAX_TL, max_block_bytes // (align_m * itemsize)))
        tl, l_pad = _choose_tile(L, cap_l, 128)

    # ---- row tile: fill the remaining budget; keep >=2 tiles for the megacore --
    cap_m = max(align_m, max_block_bytes // (tl * itemsize))
    tm, m_pad = _choose_tile(M, cap_m, align_m)
    if m_pad // tm < 2 and M >= 2 * align_m:
        tm = _round_up(-(-M // 2), align_m)
        m_pad = 2 * tm

    xf = x.reshape(M, L)
    if m_pad != M or l_pad != L:
        # Zero pads: neutral for the sum; lane pads are masked out of the max
        # inside the kernel, padded rows are sliced off below.
        xf = jnp.pad(xf, ((0, m_pad - M), (0, l_pad - L)))

    grid_m, grid_l = m_pad // tm, l_pad // tl
    inv_l = 1.0 / float(L)
    out_shape = jax.ShapeDtypeStruct((2, m_pad, 1), x.dtype)

    if grid_l == 1:
        out = pl.pallas_call(
            functools.partial(_concat_pool_single_kernel, inv_l=inv_l),
            out_shape=out_shape,
            grid_spec=pltpu.PrefetchScalarGridSpec(
                num_scalar_prefetch=0,
                grid=(grid_m,),
                in_specs=[pl.BlockSpec((tm, tl), lambda i: (i, 0))],
                out_specs=pl.BlockSpec((2, tm, 1), lambda i: (0, i, 0))),
            compiler_params=pltpu.CompilerParams(
                dimension_semantics=("parallel",),
                vmem_limit_bytes=vmem_limit_bytes),
        )(xf)
    else:
        kernel = functools.partial(_concat_pool_tiled_kernel, inv_l=inv_l,
                                   l_true=L, tl=tl, masked=(l_pad != L))
        out = pl.pallas_call(
            kernel,
            out_shape=out_shape,
            grid_spec=pltpu.PrefetchScalarGridSpec(
                num_scalar_prefetch=0,
                grid=(grid_m, grid_l),            # rows parallel, reduction last
                in_specs=[pl.BlockSpec((tm, tl), lambda i, l: (i, l))],
                out_specs=pl.BlockSpec((2, tm, 1), lambda i, l: (0, i, 0)),
                scratch_shapes=[pltpu.VMEM((tm, 1), jnp.float32),
                                pltpu.VMEM((tm, 1), jnp.float32)]),
            compiler_params=pltpu.CompilerParams(
                dimension_semantics=("parallel", "arbitrary"),
                vmem_limit_bytes=vmem_limit_bytes),
        )(xf)

    mx = out[0, :M, 0].reshape(N, C, 1, 1)
    av = out[1, :M, 0].reshape(N, C, 1, 1)
    return jnp.concatenate([mx, av], axis=1)


def _check(x, **kw):
    out = jax.block_until_ready(adaptive_concat_pool2d(x, **kw))
    ref = jnp.concatenate([jnp.max(x, axis=(2, 3), keepdims=True),
                           jnp.mean(x, axis=(2, 3), keepdims=True)], axis=1)
    N, C = x.shape[:2]
    assert out.shape == (N, 2 * C, 1, 1), out.shape
    assert jnp.allclose(out, ref, atol=1e-5, rtol=1e-5), "mismatch vs reference"


if __name__ == "__main__":
    key = jax.random.PRNGKey(0)
    k1, k2, k3 = jax.random.split(key, 3)

    # Small shape consistent with the module's pooled e5 feature map.
    _check(jax.random.normal(k1, (2, 4, 16, 16), dtype=jnp.float32))

    # Larger map: the default budget picks tl == L (contiguous DMA per row tile)
    # and splits the rows into 2 tiles so both v7x TensorCores get work.
    _check(jax.random.normal(k2, (2, 16, 64, 64), dtype=jnp.float32))

    # Force the multi-step reduction path (f32 accumulator carry across grid_l).
    _check(jax.random.normal(k2, (2, 16, 64, 64), dtype=jnp.float32),
           max_block_bytes=64 * 1024)

    # Force the padded / masked-tail path (L = 576 has no 128-multiple tile);
    # all-negative values would expose an unmasked zero pad in the max.
    _check(jax.random.normal(k3, (2, 4, 24, 24), dtype=jnp.float32) - 10.0,
           max_block_bytes=8 * 1024)

    print("KERNEL_OK")
</pallas_src>

<mosaic_0001>
module attributes {stable_mosaic.version = 11 : i64} {
  func.func @_concat_pool_single_kernel(%arg0: i32, %arg1: memref<8x256xf32, #tpu.memory_space<vmem>>, %arg2: memref<2x8x1xf32, #tpu.memory_space<vmem>>) attributes {dimension_semantics = [#tpu.dimension_semantics<parallel>], iteration_bounds = array<i64: 1>, scalar_prefetch = 0 : i64, scratch_operands = 0 : i64, tpu.core_type = #tpu.core_type<tc>, window_params = [{transform_indices = @transform_0, window_bounds = array<i64: 8, 256>}, {transform_indices = @transform_1, window_bounds = array<i64: 2, 8, 1>}]} {
    %c0 = arith.constant 0 : index
    %c0_0 = arith.constant 0 : index
    %0 = vector.load %arg1[%c0, %c0_0] : memref<8x256xf32, #tpu.memory_space<vmem>>, vector<8x256xf32>
    %cst = arith.constant dense<0xFF800000> : vector<8xf32>
    %1 = vector.multi_reduction <maximumf>, %0, %cst [1] : vector<8x256xf32> to vector<8xf32>
    %2 = vector.shape_cast %1 : vector<8xf32> to vector<8x1xf32>
    %cst_1 = arith.constant dense<0.000000e+00> : vector<8xf32>
    %3 = vector.multi_reduction <add>, %0, %cst_1 [1] : vector<8x256xf32> to vector<8xf32>
    %4 = vector.shape_cast %3 : vector<8xf32> to vector<8x1xf32>
    %c0_2 = arith.constant 0 : index
    %c0_3 = arith.constant 0 : index
    %c0_4 = arith.constant 0 : index
    %5 = vector.load %arg2[%c0_2, %c0_3, %c0_4] : memref<2x8x1xf32, #tpu.memory_space<vmem>>, vector<1x8x1xf32>
    %6 = vector.shape_cast %5 : vector<1x8x1xf32> to vector<8x1xf32>
    %7 = vector.shape_cast %2 : vector<8x1xf32> to vector<1x8x1xf32>
    tpu.vector_store %arg2[%c0_2, %c0_3, %c0_4], %7 {strides = array<i32>} : memref<2x8x1xf32, #tpu.memory_space<vmem>>, vector<1x8x1xf32>,
    %cst_5 = arith.constant 3.906250e-03 : f32
    %8 = vector.broadcast %cst_5 : f32 to vector<8x1xf32>
    %9 = arith.mulf %4, %8 : vector<8x1xf32>
    %c1 = arith.constant 1 : index
    %c0_6 = arith.constant 0 : index
    %c0_7 = arith.constant 0 : index
    %10 = vector.load %arg2[%c1, %c0_6, %c0_7] : memref<2x8x1xf32, #tpu.memory_space<vmem>>, vector<1x8x1xf32>
    %11 = vector.shape_cast %10 : vector<1x8x1xf32> to vector<8x1xf32>
    %12 = vector.shape_cast %9 : vector<8x1xf32> to vector<1x8x1xf32>
    tpu.vector_store %arg2[%c1, %c0_6, %c0_7], %12 {strides = array<i32>} : memref<2x8x1xf32, #tpu.memory_space<vmem>>, vector<1x8x1xf32>,
    return
  }
  func.func @transform_0(%arg0: i32) -> (i32, i32) {
    %c0_i32 = arith.constant 0 : i32
    %c0_i32_0 = arith.constant 0 : i32
    return %arg0, %c0_i32 : i32, i32
  }
  func.func @transform_1(%arg0: i32) -> (i32, i32, i32) {
    %c0_i32 = arith.constant 0 : i32
    %c0_i32_0 = arith.constant 0 : i32
    %c0_i32_1 = arith.constant 0 : i32
    return %c0_i32, %arg0, %c0_i32_0 : i32, i32, i32
  }
}

</mosaic_0001>

<bundles_post_ra>
// kernel: tpu_custom_call.1
= control target key start
LH: loop header
LB: loop body
LE: loop exit
PB: predicated region body
PF: predicated region fallthrough
CT: control target
= control target key end

     0   :  { %6 = vsyncpa [#allocation3], 0  ;;  %s68_s9 = smov [#allocation2]   ;;  %s88_s0 = inlined_call_operand.hbm [shape: f32[8,256], index: 0, kind: input, shape index: {}]   ;;  %s89_s1 = inlined_call_operand.vmem [shape: f32[2,8,1], index: 1, kind: output, shape index: {}]  }
   0x1   :  { %s12_s8 = sshll.u32 %s88_s0, 4  ;;  %s14_s10 = sshll.u32 %s68_s9, 4  ;;  %s13_s8 = int_to_ptr.hbm [resolvable:$true] %s12_s8  ;;  %s15_s10 = int_to_ptr.vmem [resolvable:$true] %s14_s10 }
   0x2   :  { %17 = dma.hbm_to_vmem [thread:$0]  %s13_s8, 256, %s15_s10, [#allocation3]  }
   0x3   :  { %66 = dma.done.wait [#allocation3], 256  }
   0x4   :  { %67 = vsyncadd [#allocation3], 4294967040  ;;  %v22_v0 = vld [vmem:[#allocation2] sm:$0xff]  ;;  %v23_v1 = vld [vmem:[#allocation2 + $0x8] sm:$0xff]  ;;  %vm30_vm0 = vcmask 7168  }
   0x5   :  { %v27_v2 = vadd.f32 %v23_v1, %v22_v0  ;;  %v24_v3 = vmax.f32 %v22_v0, %v23_v1 }
   0x7   :  { %28 = vadd.xlane.f32.xlu0 %v27_v2 }
   0xf   :  { %25 = vmax.xlane.f32.xlu0 %v24_v3 }
  0x7a   :  { %v29_v4 = vpop.xlane.xlu0 %28 }
  0x7b   :  { %v32_v5 = vmul.f32 0.00390625, %v29_v4 }
  0x7d   :  { %40 = vst.msk [vmem:[%s89_s1 + $0x8] sm:$0xff] %vm30_vm0, %v32_v5 }
  0x82   :  { %v26_v6 = vpop.xlane.xlu0 %25 }
  0x83   :  { %31 = vst.msk [vmem:[%s89_s1] sm:$0xff] %vm30_vm0, %v26_v6 }
  0x84   :  { %39 = vsyncpa [#allocation3], 1 }

</bundles_post_ra>
